<compile_context>
chip_gen: v7x
topology: tpu7x:2x2x1
jax: 0.10.0
libtpu: 0.0.40
codegen_flags: <defaults>
</compile_context>

<pallas_src>
import functools

import jax
import jax.numpy as jnp
from jax.experimental import pallas as pl
from jax.experimental.pallas import tpu as pltpu


def classifier_kernel(x_ref, w1_ref, b1_ref, w2_ref, b2_ref, o_ref):
    """Fused fc1 -> fc2 -> log_softmax over one (tm, V) row tile.

    Matmul operands are bf16 (MXU native), accumulation and the log-sum-exp
    path are f32 (v5e VPU/EUP have no bf16 path).
    """
    # fc1: (tm, E)bf16 @ (E, H)bf16 -> f32 acc, + f32 bias
    h = jnp.dot(x_ref[...], w1_ref[...],
                preferred_element_type=jnp.float32) + b1_ref[...]
    # fc2: cast activations back to bf16 for the MXU, accumulate in f32
    logits = jnp.dot(h.astype(jnp.bfloat16), w2_ref[...],
                     preferred_element_type=jnp.float32) + b2_ref[...]
    # numerically stable log-softmax over the vocab (last / lane) dim, all f32
    m = jnp.max(logits, axis=-1, keepdims=True)
    shifted = logits - m
    lse = jnp.log(jnp.sum(jnp.exp(shifted), axis=-1, keepdims=True))
    o_ref[...] = (shifted - lse).astype(o_ref.dtype)


@functools.partial(jax.jit, static_argnames=("tm",))
def classifier_forward(x, w1, b1, w2, b2, *, tm=256):
    """x: (B, S, E) float32. Returns log-probs (B, S, V) float32."""
    B, S, E = x.shape
    H = w1.shape[1]
    V = w2.shape[1]
    M = B * S

    # Big row tile keeps the MXU fed and amortizes the ~0.35us/grid-step
    # overhead; clamp for small problems and keep a multiple of 8 (f32 sublane).
    # For v7x megacore, realistic M gives cdiv(M, tm) >= 2 so both TCs are busy.
    tm = max(8, min(tm, ((M + 7) // 8) * 8))

    bf16 = jnp.bfloat16
    x2 = x.reshape(M, E).astype(bf16)
    w1b = w1.astype(bf16)
    w2b = w2.astype(bf16)
    b1_2 = b1.reshape(1, H).astype(jnp.float32)
    b2_2 = b2.reshape(1, V).astype(jnp.float32)

    # VMEM budget: resident single-buffered weights/biases + double-buffered
    # x / output tiles, with ~2x headroom for compiler temporaries, clamped to
    # v7x's 64 MiB physical VMEM.
    resident = (E * H + H * V) * 2 + (H + V) * 4
    streamed = 2 * tm * E * 2 + 2 * tm * V * 4
    vmem_limit = int(min(max(2 * (resident + streamed), 32 * 1024 * 1024),
                         64 * 1024 * 1024))

    cost = pl.CostEstimate(
        flops=2 * M * (E * H + H * V),
        transcendentals=M * (V + 1),
        bytes_accessed=(M * E * 2 + E * H * 2 + H * V * 2 + (H + V) * 4
                        + M * V * 4),
    )

    # NOTE: for production vocab sizes (V >> 4k) add a vocab grid axis with a
    # (H, tv) W2 block and a two-pass / online LSE accumulator; at these sizes
    # the whole bf16 (H, V) W2 fits comfortably in VMEM.
    const = lambda i: (0, 0)
    grid = (pl.cdiv(M, tm),)
    out = pl.pallas_call(
        classifier_kernel,
        out_shape=jax.ShapeDtypeStruct((M, V), jnp.float32),
        grid_spec=pltpu.PrefetchScalarGridSpec(
            num_scalar_prefetch=0,
            grid=grid,
            in_specs=[
                pl.BlockSpec((tm, E), lambda i: (i, 0)),   # x rows (streamed)
                # Weights/biases never change across grid steps: keep them
                # resident single-buffered (no wasted double-buffer VMEM).
                pl.BlockSpec((E, H), const, pipeline_mode=pl.Buffered(1)),
                pl.BlockSpec((1, H), const, pipeline_mode=pl.Buffered(1)),
                pl.BlockSpec((H, V), const, pipeline_mode=pl.Buffered(1)),
                pl.BlockSpec((1, V), const, pipeline_mode=pl.Buffered(1)),
            ],
            out_specs=pl.BlockSpec((tm, V), lambda i: (i, 0)),
        ),
        compiler_params=pltpu.CompilerParams(
            dimension_semantics=("parallel",),
            vmem_limit_bytes=vmem_limit),
        cost_estimate=cost,
    )(x2, w1b, b1_2, w2b, b2_2)
    return out.reshape(B, S, V)


def init_params(key, embedding_dim, hidden_size, trg_vocab_size):
    """Deterministic init mimicking nn.Linear default (uniform +/- 1/sqrt(fan_in)).
    Weights stored as (in_features, out_features)."""
    k1, k2, k3, k4 = jax.random.split(key, 4)
    bound1 = 1.0 / jnp.sqrt(embedding_dim)
    bound2 = 1.0 / jnp.sqrt(hidden_size)
    w1 = jax.random.uniform(k1, (embedding_dim, hidden_size),
                            jnp.float32, -bound1, bound1)
    b1 = jax.random.uniform(k2, (hidden_size,), jnp.float32, -bound1, bound1)
    w2 = jax.random.uniform(k3, (hidden_size, trg_vocab_size),
                            jnp.float32, -bound2, bound2)
    b2 = jax.random.uniform(k4, (trg_vocab_size,), jnp.float32, -bound2, bound2)
    return w1, b1, w2, b2


if __name__ == "__main__":
    # Small shapes consistent with the module: (batch, seq, embedding_dim)
    batch, seq, embedding_dim = 2, 8, 32
    hidden_size, trg_vocab_size = 256, 128

    key = jax.random.PRNGKey(0)
    kx, kp = jax.random.split(key)
    x = jax.random.normal(kx, (batch, seq, embedding_dim), jnp.float32)
    w1, b1, w2, b2 = init_params(kp, embedding_dim, hidden_size, trg_vocab_size)

    out = classifier_forward(x, w1, b1, w2, b2)
    out = jax.block_until_ready(out)
    assert out.shape == (batch, seq, trg_vocab_size)

    # Matched-precision reference (bf16 matmul operands, f32 accumulation):
    # the kernel should agree tightly with this path.
    h_ref = jnp.dot(x.astype(jnp.bfloat16), w1.astype(jnp.bfloat16),
                    preferred_element_type=jnp.float32) + b1
    logits_ref = jnp.dot(h_ref.astype(jnp.bfloat16), w2.astype(jnp.bfloat16),
                         preferred_element_type=jnp.float32) + b2
    ref_matched = jax.nn.log_softmax(logits_ref, axis=2)
    assert jnp.allclose(out, ref_matched, atol=2e-3, rtol=2e-3)

    # Full-f32 reference of the original module (fc1 -> fc2 -> LogSoftmax(dim=2));
    # looser tolerance accounts for bf16 operand rounding in the matmuls.
    ref_f32 = jax.nn.log_softmax(jnp.dot(jnp.dot(x, w1) + b1, w2) + b2, axis=2)
    assert jnp.allclose(out, ref_f32, atol=5e-2, rtol=5e-2)

    print("KERNEL_OK")
</pallas_src>

<mosaic_0001>
module attributes {stable_mosaic.version = 11 : i64} {
  func.func @classifier_kernel(%arg0: i32, %arg1: memref<16x32xbf16, #tpu.memory_space<vmem>>, %arg2: memref<32x256xbf16, #tpu.memory_space<vmem>>, %arg3: memref<1x256xf32, #tpu.memory_space<vmem>>, %arg4: memref<256x128xbf16, #tpu.memory_space<vmem>>, %arg5: memref<1x128xf32, #tpu.memory_space<vmem>>, %arg6: memref<16x128xf32, #tpu.memory_space<vmem>>) attributes {dimension_semantics = [#tpu.dimension_semantics<parallel>], iteration_bounds = array<i64: 1>, scalar_prefetch = 0 : i64, scratch_operands = 0 : i64, tpu.core_type = #tpu.core_type<tc>, window_params = [{transform_indices = @transform_0, window_bounds = array<i64: 16, 32>}, {pipeline_mode = #tpu.pipeline_mode<synchronous>, transform_indices = @transform_1, window_bounds = array<i64: 32, 256>}, {pipeline_mode = #tpu.pipeline_mode<synchronous>, transform_indices = @transform_2, window_bounds = array<i64: 1, 256>}, {pipeline_mode = #tpu.pipeline_mode<synchronous>, transform_indices = @transform_3, window_bounds = array<i64: 256, 128>}, {pipeline_mode = #tpu.pipeline_mode<synchronous>, transform_indices = @transform_4, window_bounds = array<i64: 1, 128>}, {transform_indices = @transform_5, window_bounds = array<i64: 16, 128>}]} {
    %c0 = arith.constant 0 : index
    %c0_0 = arith.constant 0 : index
    %0 = vector.load %arg1[%c0, %c0_0] : memref<16x32xbf16, #tpu.memory_space<vmem>>, vector<16x32xbf16>
    %c0_1 = arith.constant 0 : index
    %c0_2 = arith.constant 0 : index
    %1 = vector.load %arg2[%c0_1, %c0_2] : memref<32x256xbf16, #tpu.memory_space<vmem>>, vector<32x256xbf16>
    %cst = arith.constant dense<0.000000e+00> : vector<16x256xf32>
    %2 = tpu.matmul %0, %1, %cst {dimension_numbers = #tpu.dot_dimension_numbers<[1], [0], [0], [1], [0, 0, 1, 1], [], []>} : vector<16x32xbf16>, vector<32x256xbf16>, vector<16x256xf32> -> vector<16x256xf32>
    %c0_3 = arith.constant 0 : index
    %c0_4 = arith.constant 0 : index
    %3 = vector.load %arg3[%c0_3, %c0_4] : memref<1x256xf32, #tpu.memory_space<vmem>>, vector<1x256xf32>
    %4 = vector.broadcast %3 : vector<1x256xf32> to vector<16x256xf32>
    %5 = arith.addf %2, %4 : vector<16x256xf32>
    %6 = arith.truncf %5 : vector<16x256xf32> to vector<16x256xbf16>
    %c0_5 = arith.constant 0 : index
    %c0_6 = arith.constant 0 : index
    %7 = vector.load %arg4[%c0_5, %c0_6] : memref<256x128xbf16, #tpu.memory_space<vmem>>, vector<256x128xbf16>
    %cst_7 = arith.constant dense<0.000000e+00> : vector<16x128xf32>
    %8 = tpu.matmul %6, %7, %cst_7 {dimension_numbers = #tpu.dot_dimension_numbers<[1], [0], [0], [1], [0, 0, 1, 1], [], []>} : vector<16x256xbf16>, vector<256x128xbf16>, vector<16x128xf32> -> vector<16x128xf32>
    %c0_8 = arith.constant 0 : index
    %c0_9 = arith.constant 0 : index
    %9 = vector.load %arg5[%c0_8, %c0_9] : memref<1x128xf32, #tpu.memory_space<vmem>>, vector<1x128xf32>
    %10 = vector.broadcast %9 : vector<1x128xf32> to vector<16x128xf32>
    %11 = arith.addf %8, %10 : vector<16x128xf32>
    %cst_10 = arith.constant dense<0xFF800000> : vector<16xf32>
    %12 = vector.multi_reduction <maximumf>, %11, %cst_10 [1] : vector<16x128xf32> to vector<16xf32>
    %13 = vector.shape_cast %12 : vector<16xf32> to vector<16x1xf32>
    %14 = vector.broadcast %13 : vector<16x1xf32> to vector<16x128xf32>
    %15 = arith.subf %11, %14 : vector<16x128xf32>
    %16 = math.exp %15 : vector<16x128xf32>
    %cst_11 = arith.constant dense<0.000000e+00> : vector<16xf32>
    %17 = vector.multi_reduction <add>, %16, %cst_11 [1] : vector<16x128xf32> to vector<16xf32>
    %18 = vector.shape_cast %17 : vector<16xf32> to vector<16x1xf32>
    %19 = math.log %18 : vector<16x1xf32>
    %20 = vector.broadcast %19 : vector<16x1xf32> to vector<16x128xf32>
    %21 = arith.subf %15, %20 : vector<16x128xf32>
    %c0_12 = arith.constant 0 : index
    %c0_13 = arith.constant 0 : index
    %22 = vector.load %arg6[%c0_12, %c0_13] : memref<16x128xf32, #tpu.memory_space<vmem>>, vector<16x128xf32>
    tpu.vector_store %arg6[%c0_12, %c0_13], %21 {strides = array<i32>} : memref<16x128xf32, #tpu.memory_space<vmem>>, vector<16x128xf32>,
    return
  }
  func.func @transform_0(%arg0: i32) -> (i32, i32) {
    %c0_i32 = arith.constant 0 : i32
    %c0_i32_0 = arith.constant 0 : i32
    return %arg0, %c0_i32 : i32, i32
  }
  func.func @transform_1(%arg0: i32) -> (i32, i32) {
    %c0_i32 = arith.constant 0 : i32
    %c0_i32_0 = arith.constant 0 : i32
    %c0_i32_1 = arith.constant 0 : i32
    return %c0_i32, %c0_i32_0 : i32, i32
  }
  func.func @transform_2(%arg0: i32) -> (i32, i32) {
    %c0_i32 = arith.constant 0 : i32
    %c0_i32_0 = arith.constant 0 : i32
    %c0_i32_1 = arith.constant 0 : i32
    return %c0_i32, %c0_i32_0 : i32, i32
  }
  func.func @transform_3(%arg0: i32) -> (i32, i32) {
    %c0_i32 = arith.constant 0 : i32
    %c0_i32_0 = arith.constant 0 : i32
    %c0_i32_1 = arith.constant 0 : i32
    return %c0_i32, %c0_i32_0 : i32, i32
  }
  func.func @transform_4(%arg0: i32) -> (i32, i32) {
    %c0_i32 = arith.constant 0 : i32
    %c0_i32_0 = arith.constant 0 : i32
    %c0_i32_1 = arith.constant 0 : i32
    return %c0_i32, %c0_i32_0 : i32, i32
  }
  func.func @transform_5(%arg0: i32) -> (i32, i32) {
    %c0_i32 = arith.constant 0 : i32
    %c0_i32_0 = arith.constant 0 : i32
    return %arg0, %c0_i32 : i32, i32
  }
}

</mosaic_0001>

<bundles_post_ra>
// kernel: classifier_forward.1
= control target key start
LH: loop header
LB: loop body
LE: loop exit
PB: predicated region body
PF: predicated region fallthrough
CT: control target
= control target key end

     0   :  { %v432_v2 = vmov 0   ;;  %vm65_vm0 = vcmask 261120   ;;  %s547_s0 = inlined_call_operand.vmem [shape: bf16[16,32], index: 0, kind: input, shape index: {}]   ;;  %s548_s1 = inlined_call_operand.vmem [shape: bf16[32,256], index: 1, kind: input, shape index: {}]   ;;  %s549_s2 = inlined_call_operand.vmem [shape: f32[1,256], index: 2, kind: input, shape index: {}]   ;;  %s550_s3 = inlined_call_operand.vmem [shape: bf16[256,128], index: 3, kind: input, shape index: {}]   ;;  %s551_s4 = inlined_call_operand.vmem [shape: f32[1,128], index: 4, kind: input, shape index: {}]   ;;  %s552_s5 = inlined_call_operand.hbm [shape: f32[16,128], index: 5, kind: output, shape index: {}]  }
   0x1   :  { %v377_v0 = vld [vmem:[%s548_s1 + $0x4] ss:$8 sps:$4 sm:$0xff]   ;;  %v379_v1 = vld [vmem:[%s548_s1] ss:$8 sps:$4 sm:$0xff]   ;;  %101 = vmatprep.mubr.bf16.mxu0 %v432_v2  ;;  %v380_v3 = vld [vmem:[%s548_s1 + $0x14] ss:$8 sps:$4 sm:$0xff]  }
   0x2   :  { %69 = vmatprep.subr.bf16.mxu0 %v377_v0  ;;  %v382_v4 = vld [vmem:[%s548_s1 + $0x10] ss:$8 sps:$4 sm:$0xff]   ;;  %v383_v5 = vld [vmem:[%s547_s0] sm:$0xff]   ;;  %v386_v8 = vld [vmem:[%s550_s3 + $0x48] sm:$0xff]  }
   0x3   :  { %70 = vmatpush1.bf16.msra.mxu0 %v379_v1  ;;  %v384_v6 = vld [vmem:[%s550_s3 + $0x40] sm:$0xff]   ;;  %v387_v9 = vld [vmem:[%s550_s3 + $0x8] sm:$0xff]   ;;  %v388_v10 = vld [vmem:[%s550_s3 + $0x50] sm:$0xff]  }
   0x4   :  { %71 = vmatprep.subr.bf16.mxu0 %v380_v3  ;;  %v385_v7 = vld [vmem:[%s550_s3] sm:$0xff]   ;;  %351 = vmatprep.subr.bf16.mxu1 %v384_v6  ;;  %v389_v11 = vld [vmem:[%s550_s3 + $0x10] sm:$0xff]   ;;  %v390_v12 = vld [vmem:[%s550_s3 + $0x58] sm:$0xff]  }
   0x5   :  { %352 = vmatpush3.bf16.msra.mxu1 %v385_v7  ;;  %v391_v13 = vld [vmem:[%s550_s3 + $0x18] sm:$0xff]   ;;  %v392_v14 = vld [vmem:[%s550_s3 + $0x60] sm:$0xff]  }
   0x6   :  { %353 = vmatprep.subr.bf16.mxu1 %v386_v8 }
   0x7   :  { %72 = vmatpush1.bf16.msra.mxu0 %v382_v4 }
   0x9   :  { %354 = vmatpush3.bf16.msra.mxu1 %v387_v9 }
   0xa   :  { %333 = vmatmul.mubr.msk.bf16.vlgmr.msra.gmra.mrb[0].mxu0 %vm65_vm0, %v383_v5  ;;  %355 = vmatprep.subr.bf16.mxu1 %v388_v10 }
   0xd   :  { %356 = vmatpush3.bf16.msra.mxu1 %v389_v11 }
   0xe   :  { %357 = vmatprep.subr.bf16.mxu1 %v390_v12 }
   0xf   :  { %10 = vsyncpa [#allocation3], 0  ;;  %v393_v15 = vld [vmem:[%s550_s3 + $0x20] sm:$0xff]   ;;  %v394_v16 = vld [vmem:[%s550_s3 + $0x68] sm:$0xff]   ;;  %v30_v22 = vlaneseq }
  0x10   :  { %v395_v17 = vld [vmem:[%s550_s3 + $0x28] sm:$0xff]   ;;  %v396_v18 = vld [vmem:[%s550_s3 + $0x70] sm:$0xff]   ;;  %v398_v20 = vld [vmem:[%s550_s3 + $0x78] sm:$0xff]  }
  0x11   :  { %358 = vmatpush3.bf16.msra.mxu1 %v391_v13  ;;  %v397_v19 = vld [vmem:[%s550_s3 + $0x30] sm:$0xff]   ;;  %v399_v21 = vld [vmem:[%s550_s3 + $0x38] sm:$0xff]   ;;  %v31_v23 = vshrl.u32 %v30_v22, 7  ;;  %v28_v25 = vld [vmem:[%s549_s2] sm:$0x3]  ;;  %s433_s2 = smov [#allocation2]  }
  0x12   :  { %359 = vmatprep.subr.bf16.mxu1 %v392_v14  ;;  %v334_v41 = vld [vmem:[%s551_s4] ss:$0 sm:$0xff]  ;;  %s317_s4 = sshll.u32 %s433_s2, 4  ;;  %s318_s4 = int_to_ptr.vmem [resolvable:$true] %s317_s4 }
  0x13   :  { %v32_v24 = vsub.s32 0, %v31_v23  ;;  %v36_v26 = vsub.s32 1, %v31_v23  ;;  %s408_s0 = scalar_lea.vmem %s318_s4, 256  ;;  %p413_p1 = scmp.lt.s32.totalorder %s318_s4, %s318_s4 }
  0x14   :  { %p409_p0 = scmp.ne.s32.totalorder %s318_s4, %s408_s0  ;;  %p414_p2 = scmp.lt.s32.totalorder %s408_s0, %s408_s0 }
  0x15   :  { %360 = vmatpush3.bf16.msra.mxu1 %v393_v15  ;;  %v33_v27 = vrot.slane %v28_v25, %v32_v24  ;;  %v37_v29 = vrot.slane %v28_v25, %v36_v26 }
  0x16   :  { %361 = vmatprep.subr.bf16.mxu1 %v394_v16  ;;  %p415_p3 = por %p414_p2, %p413_p1 }
  0x18   :  { %p416_p4 = pnand %p415_p3, %p409_p0 }
  0x19   :  { %362 = vmatpush3.bf16.msra.mxu1 %v395_v17 }
  0x1a   :  { %363 = vmatprep.subr.bf16.mxu1 %v396_v18 }
  0x1d   :  { %364 = vmatpush3.bf16.msra.mxu1 %v397_v19 }
  0x1e   :  { %365 = vmatprep.subr.bf16.mxu1 %v398_v20 }
  0x21   :  { %366 = vmatpush3.bf16.msra.mxu1 %v399_v21 }
  0xdd   :  { %v103_v28 = vpop.f32.mrb[0].mxu0 }
  0xde   :  { %v105_v30 = vpop.f32.mrb[1].mxu0  ;;  %v104_v32 = vadd.f32 %v103_v28, %v33_v27 }
  0xdf   :  { %v107_v31 = vpop.f32.mrb[2].mxu0  ;;  %v106_v35 = vadd.f32 %v105_v30, %v37_v29 }
  0xe0   :  { %v108_v33 = vadd.f32 %v107_v31, %v33_v27  ;;  %v109_v34 = vpop.f32.mrb[3].mxu0 }
  0xe1   :  { %v110_v36 = vadd.f32 %v109_v34, %v37_v29 }
  0xe2   :  { %v112_v37 = vpack.c.bf16 %v108_v33, %v104_v32 }
  0xe3   :  { %v113_v38 = vpack.c.bf16 %v110_v36, %v106_v35 }
  0xe5   :  { %281 = vmatprep.mubr.bf16.mxu1 %v113_v38 }
  0xe6   :  { %282 = vmatmul.mubr.bf16.vlgmr.msra.gmra.mrb[0].mxu1 %v112_v37 }
 0x1b9   :  { %v367_v39 = vpop.f32.mrb[0].mxu1 }
 0x1ba   :  { %v368_v40 = vpop.f32.mrb[1].mxu1 }
 0x1bb   :  { %v369_v42 = vadd.f32 %v368_v40, %v367_v39  ;;  %v370_v43 = vpop.f32.mrb[2].mxu1 }
 0x1bc   :  { %v371_v44 = vpop.f32.mrb[3].mxu1 }
 0x1bd   :  { %v372_v45 = vadd.f32 %v371_v44, %v370_v43  ;;  %v284_v46 = vadd.f32 %v369_v42, %v334_v41 }
 0x1bf   :  { %290 = vmax.xlane.f32.xlu0 %v284_v46  ;;  %v287_v47 = vadd.f32 %v372_v45, %v334_v41 }
 0x1c3   :  { %292 = vmax.xlane.f32.xlu0 %v287_v47 }
 0x24c   :  { %v291_v48 = vpop.xlane.xlu0 %290 }
 0x24d   :  { %v294_v49 = vsub.f32 %v284_v46, %v291_v48 }
 0x24f   :  { %v296_v50 = vmul.f32 1.442695, %v294_v49 }
 0x250   :  { %v293_v51 = vpop.xlane.xlu0 %292 }
 0x251   :  { %v295_v52 = vsub.f32 %v287_v47, %v293_v51  ;;  %400 = vpow2.f32 %v296_v50 }
 0x253   :  { %v298_v53 = vmul.f32 1.442695, %v295_v52 }
 0x255   :  { %402 = vpow2.f32 %v298_v53 }
 0x25b   :  { %v401_v54 = vpop.eup %400 }
 0x25c   :  { %300 = vadd.xlane.f32.xlu1 %v401_v54 }
 0x25f   :  { %v403_v55 = vpop.eup %402 }
 0x260   :  { %302 = vadd.xlane.f32.xlu1 %v403_v55 }
 0x2e9   :  { %v301_v56 = vpop.xlane.xlu1 %300 }
 0x2ea   :  { %404 = vlog2.f32 %v301_v56 }
 0x2ed   :  { %v303_v57 = vpop.xlane.xlu1 %302 }
 0x2ee   :  { %406 = vlog2.f32 %v303_v57 }
 0x2f4   :  { %v405_v58 = vpop.eup %404 }
 0x2f5   :  { %v305_v59 = vmul.f32 0.6931472, %v405_v58 }
 0x2f7   :  { %v308_v60 = vsub.f32 %v294_v49, %v305_v59 }
 0x2f8   :  { %v407_v61 = vpop.eup %406 }
 0x2f9   :  { %310 = vst [vmem:[#allocation2] sm:$0xff] %v308_v60  ;;  %v307_v62 = vmul.f32 0.6931472, %v407_v61 }
 0x2fb   :  { %v309_v63 = vsub.f32 %v295_v52, %v307_v62 }
 0x2fd   :  { %311 = vst [vmem:[#allocation2 + $0x8] sm:$0xff] %v309_v63 }
 0x2fe   :  { %419 = shalt.err (!%p416_p4)
}
 0x2ff   :  { %s420_s12 = scalar_lea.hbm %s552_s5, 256 }
 0x300   :  { %p421_p5 = scmp.ne.s32.totalorder %s552_s5, %s420_s12  ;;  %p424_p6 = scmp.lt.u32.totalorder %s420_s12, %s552_s5 }
 0x302   :  { %p426_p7 = pnand %p424_p6, %p421_p5 }
 0x304   :  { %429 = shalt.err (!%p426_p7)
}
 0x305   :  { %s434_s17 = smov 128   ;;  %s435_s18 = smov 8  }
 0x306   :  { %323 = dma.vmem_to_hbm [thread:$0]  %s318_s4, 256, %s552_s5, [#allocation3], %s434_s17, %s434_s17, %s435_s18  }
 0x307   :  { %430 = dma.done.wait [#allocation3], 256  }
 0x308   :  { %431 = vsyncadd [#allocation3], 4294967040 }
 0x309   :  { %327 = vsyncpa [#allocation3], 1 }

</bundles_post_ra>
